<compile_context>
chip_gen: v7x
topology: tpu7x:2x2x1
jax: 0.10.0
libtpu: 0.0.40
codegen_flags: <defaults>
</compile_context>

<pallas_src>
import functools

import jax
import jax.numpy as jnp
from jax.experimental import pallas as pl
from jax.experimental.pallas import tpu as pltpu


def _round_up(x, m):
    return ((x + m - 1) // m) * m


def _pad_to(x, shape):
    pads = [(0, s - d) for d, s in zip(x.shape, shape)]
    return jnp.pad(x, pads)


def _pick_batch_block(b, cap=64):
    # One grid step handles `tb` batch rows.  tb must divide B; when the grid has
    # more than one step, keep tb a multiple of 8 so blocked second-to-last dims
    # respect the (8, 128) tiling rule.
    if b <= cap:
        return b
    for d in range(cap, 0, -1):
        if b % d == 0 and d % 8 == 0:
            return d
    return b


# ---------------------------------------------------------------------------
# Fused kernel: gather -> CNN+MAXpool -> MLP+LayerNorm -> attention -> merge
# ---------------------------------------------------------------------------
def _fused_kernel(ids_ref, tbl_ref, mv_ref,
                  w1_ref, b1_ref, w2_ref, b2_ref, w3_ref, b3_ref,
                  g_ref, be_ref, wc_ref, cb_ref, sq_ref,
                  o_ref, *, tb, m, l, k, f_real, vocab):
    fp = o_ref.shape[-1]          # padded feature width (multiple of 128)
    rows = tb * m * l             # flattened (batch-block, review, token) rows
    lout = l - k + 1

    # ---- id view: mlp_layers (Linear->ReLU->Linear->ReLU->Linear) + LayerNorm ----
    h = jnp.dot(mv_ref[...], w1_ref[...], preferred_element_type=jnp.float32) + b1_ref[...]
    h = jnp.maximum(h, 0.0)
    h = jnp.dot(h, w2_ref[...], preferred_element_type=jnp.float32) + b2_ref[...]
    h = jnp.maximum(h, 0.0)
    h = jnp.dot(h, w3_ref[...], preferred_element_type=jnp.float32) + b3_ref[...]
    # Padded columns of h are exactly 0, so plain sums / f_real give the un-padded
    # mean and E[x^2]; gamma/beta padding keeps padded output columns at 0.
    inv_f = 1.0 / f_real
    mean = jnp.sum(h, axis=-1, keepdims=True) * inv_f
    var = jnp.sum(h * h, axis=-1, keepdims=True) * inv_f - mean * mean
    mv = (h - mean) * jax.lax.rsqrt(var + 1e-5) * g_ref[...] + be_ref[...]    # (tb, fp)

    # ---- review view: in-kernel word-embedding gather (one-hot @ table, MXU) ----
    ids = ids_ref[...]                                                # (rows, 1) int32
    vocab_iota = jax.lax.broadcasted_iota(jnp.int32, (rows, vocab), 1)
    onehot = (ids == vocab_iota).astype(jnp.float32)                  # (rows, vocab)
    emb = jnp.dot(onehot, tbl_ref[...], preferred_element_type=jnp.float32)   # (rows, D)

    # ---- CNN encoder: K shifted taps -> (rows, K*D) patches -> single matmul ----
    # roll(emb, rows - j) puts emb[i + j] at row i (jnp.roll semantics).
    parts = [emb] + [pltpu.roll(emb, rows - j, 0) for j in range(1, k)]
    patches = jnp.concatenate(parts, axis=1) if k > 1 else emb        # (rows, K*D)
    conv = jnp.dot(patches, wc_ref[...], preferred_element_type=jnp.float32) + cb_ref[...]
    conv = jnp.maximum(conv, 0.0)                                     # ReLU
    conv = conv.reshape(tb * m, l, fp)
    t_iota = jax.lax.broadcasted_iota(jnp.int32, (tb * m, l, 1), 1)
    conv = jnp.where(t_iota < lout, conv, 0.0)     # drop wrapped / out-of-range taps
    r_fea = jnp.max(conv, axis=1)                                     # (tb*m, fp) MAX pool

    # ---- additive attention over reviews + softmax + merge ('add') ----
    sq = sq_ref[...] + mv                                             # att_method == 'add'
    r3 = r_fea.reshape(tb, m, fp)
    att = jnp.sum(r3 * sq[:, None, :], axis=2, keepdims=True)         # bmm -> (tb, m, 1)
    att = att - jnp.max(att, axis=1, keepdims=True)                   # stable softmax
    e = jnp.exp(att)
    att = e / jnp.sum(e, axis=1, keepdims=True)                       # softmax over reviews
    # NOTE: the reference's F.relu(r_fea) here is a no-op (r_fea >= 0 after
    # ReLU + MAX-pool), so it is elided.
    r = jnp.sum(r3 * att, axis=1)                                     # (tb, fp)
    o_ref[...] = r + mv                                               # rm_merge == 'add'


# ---------------------------------------------------------------------------
# Wrapper: pads params to lane-dense widths and launches the fused kernel.
# ---------------------------------------------------------------------------
def multi_view_forward(params, review, index, *, batch_block_cap=64):
    B, M, L = review.shape
    V, D = params["word_embs"].shape
    K, _, F = params["conv_w"].shape
    IN = params["id_embedding"].shape[1]
    H1 = params["w1"].shape[1]
    H2 = params["w2"].shape[1]

    FP = _round_up(F, 128)
    H1P = _round_up(H1, 128)
    H2P = _round_up(H2, 128)
    f32 = jnp.float32

    # zero-pad every lane dim that is a matmul output / store target to 128
    w1p = _pad_to(params["w1"].astype(f32), (IN, H1P))
    b1p = _pad_to(params["b1"].astype(f32), (1, H1P))
    w2p = _pad_to(params["w2"].astype(f32), (H1P, H2P))
    b2p = _pad_to(params["b2"].astype(f32), (1, H2P))
    w3p = _pad_to(params["w3"].astype(f32), (H2P, FP))
    b3p = _pad_to(params["b3"].astype(f32), (1, FP))
    gp = _pad_to(params["ln_gamma"].astype(f32), (1, FP))
    bp = _pad_to(params["ln_beta"].astype(f32), (1, FP))
    wcp = _pad_to(params["conv_w"].astype(f32).reshape(K * D, F), (K * D, FP))
    cbp = _pad_to(params["conv_b"].astype(f32), (1, FP))
    sqp = _pad_to(params["s_query_v"].astype(f32), (1, FP))

    # id embedding lookup (uori == 'user'); tiny (B x item_num), stays in XLA
    mv_raw = jnp.take(params["id_embedding"].astype(f32), index, axis=0)     # (B, IN)
    ids = review.reshape(B * M * L, 1).astype(jnp.int32)

    TB = _pick_batch_block(B, batch_block_cap)
    grid = (B // TB,)
    kernel = functools.partial(_fused_kernel, tb=TB, m=M, l=L, k=K,
                               f_real=float(F), vocab=V)
    bcast = lambda i: (0, 0)

    out = pl.pallas_call(
        kernel,
        out_shape=jax.ShapeDtypeStruct((B, FP), f32),
        grid=grid,
        in_specs=[
            pl.BlockSpec((TB * M * L, 1), lambda i: (i, 0)),   # review token ids
            pl.BlockSpec((V, D), bcast),                       # word-emb table
            pl.BlockSpec((TB, IN), lambda i: (i, 0)),          # id-emb rows
            pl.BlockSpec((IN, H1P), bcast),                    # w1 (padded)
            pl.BlockSpec((1, H1P), bcast),                     # b1
            pl.BlockSpec((H1P, H2P), bcast),                   # w2
            pl.BlockSpec((1, H2P), bcast),                     # b2
            pl.BlockSpec((H2P, FP), bcast),                    # w3
            pl.BlockSpec((1, FP), bcast),                      # b3
            pl.BlockSpec((1, FP), bcast),                      # ln gamma
            pl.BlockSpec((1, FP), bcast),                      # ln beta
            pl.BlockSpec((K * D, FP), bcast),                  # conv weight (K*D, FP)
            pl.BlockSpec((1, FP), bcast),                      # conv bias
            pl.BlockSpec((1, FP), bcast),                      # s_query_v
        ],
        out_specs=pl.BlockSpec((TB, FP), lambda i: (i, 0)),
        compiler_params=pltpu.CompilerParams(
            dimension_semantics=("parallel",),
            vmem_limit_bytes=32 * 1024 * 1024,
        ),
    )(ids, params["word_embs"].astype(f32), mv_raw,
      w1p, b1p, w2p, b2p, w3p, b3p, gp, bp, wcp, cbp, sqp)

    return out[:, :F]                                          # drop lane padding


# ---------------------------------------------------------------------------
# Pure-JAX reference (same math as the PyTorch forward path) for validation.
# ---------------------------------------------------------------------------
def multi_view_reference(params, review, index):
    B, M, L = review.shape
    K, D, F = params["conv_w"].shape
    emb = params["word_embs"][review]                          # (B, M, L, D)
    mv = params["id_embedding"][index]                         # (B, IN)
    h = jnp.maximum(mv @ params["w1"] + params["b1"], 0.0)
    h = jnp.maximum(h @ params["w2"] + params["b2"], 0.0)
    h = h @ params["w3"] + params["b3"]
    mean = h.mean(-1, keepdims=True)
    var = ((h - mean) ** 2).mean(-1, keepdims=True)
    mv_out = (h - mean) / jnp.sqrt(var + 1e-5) * params["ln_gamma"] + params["ln_beta"]

    x = emb.reshape(B * M, L, D)
    lout = L - K + 1
    w_flat = params["conv_w"].reshape(K * D, F)
    convs = []
    for t in range(lout):
        patch = x[:, t:t + K, :].reshape(B * M, K * D)
        convs.append(patch @ w_flat + params["conv_b"])
    conv = jnp.maximum(jnp.stack(convs, axis=1), 0.0)          # (B*M, lout, F)
    r_fea = conv.max(axis=1).reshape(B, M, F)

    sq = params["s_query_v"] + mv_out                          # (B, F)
    att = jnp.einsum("bmf,bf->bm", r_fea, sq)[..., None]       # (B, M, 1)
    att = jax.nn.softmax(att, axis=1)
    r = (jnp.maximum(r_fea, 0.0) * att).sum(axis=1)            # (B, F)
    return mv_out + r                                          # rm_merge == 'add'


if __name__ == "__main__":
    # small opt config
    vocab_size, word_dim = 50, 16
    user_num, item_num = 8, 16          # uori='user' -> id_num = item_num
    r_filters_num = 32
    kernel_size = 3
    B, max_num, review_len = 2, 3, 8

    key = jax.random.PRNGKey(0)
    ks = jax.random.split(key, 16)

    params = {
        "word_embs": 0.1 * jax.random.normal(ks[0], (vocab_size, word_dim), jnp.float32),
        "id_embedding": jax.random.normal(ks[1], (user_num, item_num), jnp.float32),
        # mlp_layers: item_num -> item_num//2 -> item_num//4 -> r_filters_num
        "w1": 0.1 * jax.random.normal(ks[2], (item_num, item_num // 2), jnp.float32),
        "b1": jnp.full((1, item_num // 2), 0.1, jnp.float32),
        "w2": 0.1 * jax.random.normal(ks[3], (item_num // 2, item_num // 4), jnp.float32),
        "b2": jnp.full((1, item_num // 4), 0.1, jnp.float32),
        "w3": 0.1 * jax.random.normal(ks[4], (item_num // 4, r_filters_num), jnp.float32),
        "b3": jnp.full((1, r_filters_num), 0.1, jnp.float32),
        "ln_gamma": jnp.ones((1, r_filters_num), jnp.float32),
        "ln_beta": jnp.zeros((1, r_filters_num), jnp.float32),
        # CNN encoder: Conv2d(1, F, (K, D)) stored as (K, D, F)
        "conv_w": 0.1 * jax.random.normal(ks[5], (kernel_size, word_dim, r_filters_num), jnp.float32),
        "conv_b": jax.random.uniform(ks[6], (1, r_filters_num), jnp.float32, -0.1, 0.1),
        "s_query_v": jax.random.normal(ks[7], (1, r_filters_num), jnp.float32),
    }

    review = jax.random.randint(ks[8], (B, max_num, review_len), 0, vocab_size, jnp.int32)
    index = jax.random.randint(ks[9], (B,), 0, user_num, jnp.int32)

    out = jax.jit(multi_view_forward)(params, review, index)
    out = jax.block_until_ready(out)
    assert out.shape == (B, r_filters_num) and out.dtype == jnp.float32

    ref = jax.block_until_ready(multi_view_reference(params, review, index))
    assert bool(jnp.allclose(out, ref, rtol=2e-3, atol=2e-3)), (
        "kernel/reference mismatch: max |diff| = %g" % float(jnp.max(jnp.abs(out - ref))))

    print("KERNEL_OK")
</pallas_src>

<mosaic_0001>
module attributes {stable_mosaic.version = 11 : i64} {
  func.func @_fused_kernel(%arg0: i32, %arg1: memref<48x1xi32, #tpu.memory_space<vmem>>, %arg2: memref<50x16xf32, #tpu.memory_space<vmem>>, %arg3: memref<2x16xf32, #tpu.memory_space<vmem>>, %arg4: memref<16x128xf32, #tpu.memory_space<vmem>>, %arg5: memref<1x128xf32, #tpu.memory_space<vmem>>, %arg6: memref<128x128xf32, #tpu.memory_space<vmem>>, %arg7: memref<1x128xf32, #tpu.memory_space<vmem>>, %arg8: memref<128x128xf32, #tpu.memory_space<vmem>>, %arg9: memref<1x128xf32, #tpu.memory_space<vmem>>, %arg10: memref<1x128xf32, #tpu.memory_space<vmem>>, %arg11: memref<1x128xf32, #tpu.memory_space<vmem>>, %arg12: memref<48x128xf32, #tpu.memory_space<vmem>>, %arg13: memref<1x128xf32, #tpu.memory_space<vmem>>, %arg14: memref<1x128xf32, #tpu.memory_space<vmem>>, %arg15: memref<2x128xf32, #tpu.memory_space<vmem>>) attributes {dimension_semantics = [#tpu.dimension_semantics<parallel>], iteration_bounds = array<i64: 1>, scalar_prefetch = 0 : i64, scratch_operands = 0 : i64, tpu.core_type = #tpu.core_type<tc>, window_params = [{transform_indices = @transform_0, window_bounds = array<i64: 48, 1>}, {pipeline_mode = #tpu.pipeline_mode<synchronous>, transform_indices = @transform_1, window_bounds = array<i64: 50, 16>}, {transform_indices = @transform_2, window_bounds = array<i64: 2, 16>}, {pipeline_mode = #tpu.pipeline_mode<synchronous>, transform_indices = @transform_3, window_bounds = array<i64: 16, 128>}, {pipeline_mode = #tpu.pipeline_mode<synchronous>, transform_indices = @transform_4, window_bounds = array<i64: 1, 128>}, {pipeline_mode = #tpu.pipeline_mode<synchronous>, transform_indices = @transform_5, window_bounds = array<i64: 128, 128>}, {pipeline_mode = #tpu.pipeline_mode<synchronous>, transform_indices = @transform_6, window_bounds = array<i64: 1, 128>}, {pipeline_mode = #tpu.pipeline_mode<synchronous>, transform_indices = @transform_7, window_bounds = array<i64: 128, 128>}, {pipeline_mode = #tpu.pipeline_mode<synchronous>, transform_indices = @transform_8, window_bounds = array<i64: 1, 128>}, {pipeline_mode = #tpu.pipeline_mode<synchronous>, transform_indices = @transform_9, window_bounds = array<i64: 1, 128>}, {pipeline_mode = #tpu.pipeline_mode<synchronous>, transform_indices = @transform_10, window_bounds = array<i64: 1, 128>}, {pipeline_mode = #tpu.pipeline_mode<synchronous>, transform_indices = @transform_11, window_bounds = array<i64: 48, 128>}, {pipeline_mode = #tpu.pipeline_mode<synchronous>, transform_indices = @transform_12, window_bounds = array<i64: 1, 128>}, {pipeline_mode = #tpu.pipeline_mode<synchronous>, transform_indices = @transform_13, window_bounds = array<i64: 1, 128>}, {transform_indices = @transform_14, window_bounds = array<i64: 2, 128>}]} {
    %c0 = arith.constant 0 : index
    %c0_0 = arith.constant 0 : index
    %0 = vector.load %arg3[%c0, %c0_0] : memref<2x16xf32, #tpu.memory_space<vmem>>, vector<2x16xf32>
    %c0_1 = arith.constant 0 : index
    %c0_2 = arith.constant 0 : index
    %1 = vector.load %arg4[%c0_1, %c0_2] : memref<16x128xf32, #tpu.memory_space<vmem>>, vector<16x128xf32>
    %cst = arith.constant dense<0.000000e+00> : vector<2x128xf32>
    %2 = tpu.matmul %0, %1, %cst {dimension_numbers = #tpu.dot_dimension_numbers<[1], [0], [0], [1], [0, 0, 1, 1], [], []>} : vector<2x16xf32>, vector<16x128xf32>, vector<2x128xf32> -> vector<2x128xf32>
    %c0_3 = arith.constant 0 : index
    %c0_4 = arith.constant 0 : index
    %3 = vector.load %arg5[%c0_3, %c0_4] : memref<1x128xf32, #tpu.memory_space<vmem>>, vector<1x128xf32>
    %4 = vector.broadcast %3 : vector<1x128xf32> to vector<2x128xf32>
    %5 = arith.addf %2, %4 : vector<2x128xf32>
    %cst_5 = arith.constant 0.000000e+00 : f32
    %6 = vector.broadcast %cst_5 : f32 to vector<2x128xf32>
    %7 = arith.maximumf %5, %6 : vector<2x128xf32>
    %c0_6 = arith.constant 0 : index
    %c0_7 = arith.constant 0 : index
    %8 = vector.load %arg6[%c0_6, %c0_7] : memref<128x128xf32, #tpu.memory_space<vmem>>, vector<128x128xf32>
    %cst_8 = arith.constant dense<0.000000e+00> : vector<2x128xf32>
    %9 = tpu.matmul %7, %8, %cst_8 {dimension_numbers = #tpu.dot_dimension_numbers<[1], [0], [0], [1], [0, 0, 1, 1], [], []>} : vector<2x128xf32>, vector<128x128xf32>, vector<2x128xf32> -> vector<2x128xf32>
    %c0_9 = arith.constant 0 : index
    %c0_10 = arith.constant 0 : index
    %10 = vector.load %arg7[%c0_9, %c0_10] : memref<1x128xf32, #tpu.memory_space<vmem>>, vector<1x128xf32>
    %11 = vector.broadcast %10 : vector<1x128xf32> to vector<2x128xf32>
    %12 = arith.addf %9, %11 : vector<2x128xf32>
    %cst_11 = arith.constant 0.000000e+00 : f32
    %13 = vector.broadcast %cst_11 : f32 to vector<2x128xf32>
    %14 = arith.maximumf %12, %13 : vector<2x128xf32>
    %c0_12 = arith.constant 0 : index
    %c0_13 = arith.constant 0 : index
    %15 = vector.load %arg8[%c0_12, %c0_13] : memref<128x128xf32, #tpu.memory_space<vmem>>, vector<128x128xf32>
    %cst_14 = arith.constant dense<0.000000e+00> : vector<2x128xf32>
    %16 = tpu.matmul %14, %15, %cst_14 {dimension_numbers = #tpu.dot_dimension_numbers<[1], [0], [0], [1], [0, 0, 1, 1], [], []>} : vector<2x128xf32>, vector<128x128xf32>, vector<2x128xf32> -> vector<2x128xf32>
    %c0_15 = arith.constant 0 : index
    %c0_16 = arith.constant 0 : index
    %17 = vector.load %arg9[%c0_15, %c0_16] : memref<1x128xf32, #tpu.memory_space<vmem>>, vector<1x128xf32>
    %18 = vector.broadcast %17 : vector<1x128xf32> to vector<2x128xf32>
    %19 = arith.addf %16, %18 : vector<2x128xf32>
    %cst_17 = arith.constant dense<0.000000e+00> : vector<2xf32>
    %20 = vector.multi_reduction <add>, %19, %cst_17 [1] : vector<2x128xf32> to vector<2xf32>
    %21 = vector.shape_cast %20 : vector<2xf32> to vector<2x1xf32>
    %cst_18 = arith.constant 3.125000e-02 : f32
    %22 = vector.broadcast %cst_18 : f32 to vector<2x1xf32>
    %23 = arith.mulf %21, %22 : vector<2x1xf32>
    %24 = arith.mulf %19, %19 : vector<2x128xf32>
    %cst_19 = arith.constant dense<0.000000e+00> : vector<2xf32>
    %25 = vector.multi_reduction <add>, %24, %cst_19 [1] : vector<2x128xf32> to vector<2xf32>
    %26 = vector.shape_cast %25 : vector<2xf32> to vector<2x1xf32>
    %cst_20 = arith.constant 3.125000e-02 : f32
    %27 = vector.broadcast %cst_20 : f32 to vector<2x1xf32>
    %28 = arith.mulf %26, %27 : vector<2x1xf32>
    %29 = arith.mulf %23, %23 : vector<2x1xf32>
    %30 = arith.subf %28, %29 : vector<2x1xf32>
    %31 = vector.broadcast %23 : vector<2x1xf32> to vector<2x128xf32>
    %32 = arith.subf %19, %31 : vector<2x128xf32>
    %cst_21 = arith.constant 9.99999974E-6 : f32
    %33 = vector.broadcast %cst_21 : f32 to vector<2x1xf32>
    %34 = arith.addf %30, %33 : vector<2x1xf32>
    %35 = math.rsqrt %34 : vector<2x1xf32>
    %36 = vector.broadcast %35 : vector<2x1xf32> to vector<2x128xf32>
    %37 = arith.mulf %32, %36 : vector<2x128xf32>
    %c0_22 = arith.constant 0 : index
    %c0_23 = arith.constant 0 : index
    %38 = vector.load %arg10[%c0_22, %c0_23] : memref<1x128xf32, #tpu.memory_space<vmem>>, vector<1x128xf32>
    %39 = vector.broadcast %38 : vector<1x128xf32> to vector<2x128xf32>
    %40 = arith.mulf %37, %39 : vector<2x128xf32>
    %c0_24 = arith.constant 0 : index
    %c0_25 = arith.constant 0 : index
    %41 = vector.load %arg11[%c0_24, %c0_25] : memref<1x128xf32, #tpu.memory_space<vmem>>, vector<1x128xf32>
    %42 = vector.broadcast %41 : vector<1x128xf32> to vector<2x128xf32>
    %43 = arith.addf %40, %42 : vector<2x128xf32>
    %c0_26 = arith.constant 0 : index
    %c0_27 = arith.constant 0 : index
    %44 = vector.load %arg1[%c0_26, %c0_27] : memref<48x1xi32, #tpu.memory_space<vmem>>, vector<48x1xi32>
    %45 = tpu.iota {dimensions = array<i32: 1>} : vector<48x50xi32>
    %46 = vector.broadcast %44 : vector<48x1xi32> to vector<48x50xi32>
    %47 = arith.cmpi eq, %46, %45 : vector<48x50xi32>
    %48 = arith.extui %47 : vector<48x50xi1> to vector<48x50xi32>
    %49 = arith.sitofp %48 : vector<48x50xi32> to vector<48x50xf32>
    %c0_28 = arith.constant 0 : index
    %c0_29 = arith.constant 0 : index
    %50 = vector.load %arg2[%c0_28, %c0_29] : memref<50x16xf32, #tpu.memory_space<vmem>>, vector<50x16xf32>
    %cst_30 = arith.constant dense<0.000000e+00> : vector<48x16xf32>
    %51 = tpu.matmul %49, %50, %cst_30 {dimension_numbers = #tpu.dot_dimension_numbers<[1], [0], [0], [1], [0, 0, 1, 1], [], []>} : vector<48x50xf32>, vector<50x16xf32>, vector<48x16xf32> -> vector<48x16xf32>
    %c47_i32 = arith.constant 47 : i32
    %52 = tpu.dynamic_rotate %51 by %c47_i32 dim 0 : vector<48x16xf32>, i32 -> vector<48x16xf32>
    %c46_i32 = arith.constant 46 : i32
    %53 = tpu.dynamic_rotate %51 by %c46_i32 dim 0 : vector<48x16xf32>, i32 -> vector<48x16xf32>
    %54 = tpu.concatenate %51, %52, %53 in 1 : vector<48x16xf32>, vector<48x16xf32>, vector<48x16xf32> -> vector<48x48xf32>
    %c0_31 = arith.constant 0 : index
    %c0_32 = arith.constant 0 : index
    %55 = vector.load %arg12[%c0_31, %c0_32] : memref<48x128xf32, #tpu.memory_space<vmem>>, vector<48x128xf32>
    %cst_33 = arith.constant dense<0.000000e+00> : vector<48x128xf32>
    %56 = tpu.matmul %54, %55, %cst_33 {dimension_numbers = #tpu.dot_dimension_numbers<[1], [0], [0], [1], [0, 0, 1, 1], [], []>} : vector<48x48xf32>, vector<48x128xf32>, vector<48x128xf32> -> vector<48x128xf32>
    %c0_34 = arith.constant 0 : index
    %c0_35 = arith.constant 0 : index
    %57 = vector.load %arg13[%c0_34, %c0_35] : memref<1x128xf32, #tpu.memory_space<vmem>>, vector<1x128xf32>
    %58 = vector.broadcast %57 : vector<1x128xf32> to vector<48x128xf32>
    %59 = arith.addf %56, %58 : vector<48x128xf32>
    %cst_36 = arith.constant 0.000000e+00 : f32
    %60 = vector.broadcast %cst_36 : f32 to vector<48x128xf32>
    %61 = arith.maximumf %59, %60 : vector<48x128xf32>
    %62 = vector.shape_cast %61 : vector<48x128xf32> to vector<6x8x128xf32>
    %63 = tpu.iota {dimensions = array<i32: 1>} : vector<6x8x1xi32>
    %c6_i32 = arith.constant 6 : i32
    %64 = vector.broadcast %c6_i32 : i32 to vector<6x8x1xi32>
    %65 = arith.cmpi slt, %63, %64 : vector<6x8x1xi32>
    %cst_37 = arith.constant 0.000000e+00 : f32
    %66 = vector.shape_cast %65 : vector<6x8x1xi1> to vector<6x8x1xi1>
    %67 = vector.broadcast %66 : vector<6x8x1xi1> to vector<6x8x128xi1>
    %68 = vector.broadcast %cst_37 : f32 to vector<6x8x128xf32>
    %69 = arith.select %67, %62, %68 : vector<6x8x128xi1>, vector<6x8x128xf32>
    %cst_38 = arith.constant dense<0xFF800000> : vector<6x128xf32>
    %70 = vector.multi_reduction <maximumf>, %69, %cst_38 [1] : vector<6x8x128xf32> to vector<6x128xf32>
    %c0_39 = arith.constant 0 : index
    %c0_40 = arith.constant 0 : index
    %71 = vector.load %arg14[%c0_39, %c0_40] : memref<1x128xf32, #tpu.memory_space<vmem>>, vector<1x128xf32>
    %72 = vector.broadcast %71 : vector<1x128xf32> to vector<2x128xf32>
    %73 = arith.addf %72, %43 : vector<2x128xf32>
    %74 = vector.shape_cast %70 : vector<6x128xf32> to vector<2x3x128xf32>
    %75 = vector.shape_cast %73 : vector<2x128xf32> to vector<2x1x128xf32>
    %76 = vector.broadcast %75 : vector<2x1x128xf32> to vector<2x3x128xf32>
    %77 = arith.mulf %74, %76 : vector<2x3x128xf32>
    %cst_41 = arith.constant dense<0.000000e+00> : vector<2x3xf32>
    %78 = vector.multi_reduction <add>, %77, %cst_41 [2] : vector<2x3x128xf32> to vector<2x3xf32>
    %79 = vector.shape_cast %78 : vector<2x3xf32> to vector<2x3x1xf32>
    %cst_42 = arith.constant dense<0xFF800000> : vector<2x1xf32>
    %80 = vector.multi_reduction <maximumf>, %79, %cst_42 [1] : vector<2x3x1xf32> to vector<2x1xf32>
    %81 = vector.shape_cast %80 : vector<2x1xf32> to vector<2x1x1xf32>
    %82 = vector.broadcast %81 : vector<2x1x1xf32> to vector<2x3x1xf32>
    %83 = arith.subf %79, %82 : vector<2x3x1xf32>
    %84 = math.exp %83 : vector<2x3x1xf32>
    %cst_43 = arith.constant dense<0.000000e+00> : vector<2x1xf32>
    %85 = vector.multi_reduction <add>, %84, %cst_43 [1] : vector<2x3x1xf32> to vector<2x1xf32>
    %86 = vector.shape_cast %85 : vector<2x1xf32> to vector<2x1x1xf32>
    %87 = vector.broadcast %86 : vector<2x1x1xf32> to vector<2x3x1xf32>
    %88 = arith.divf %84, %87 : vector<2x3x1xf32>
    %89 = vector.broadcast %88 : vector<2x3x1xf32> to vector<2x3x128xf32>
    %90 = arith.mulf %74, %89 : vector<2x3x128xf32>
    %cst_44 = arith.constant dense<0.000000e+00> : vector<2x128xf32>
    %91 = vector.multi_reduction <add>, %90, %cst_44 [1] : vector<2x3x128xf32> to vector<2x128xf32>
    %92 = arith.addf %91, %43 : vector<2x128xf32>
    %c0_45 = arith.constant 0 : index
    %c0_46 = arith.constant 0 : index
    %93 = vector.load %arg15[%c0_45, %c0_46] : memref<2x128xf32, #tpu.memory_space<vmem>>, vector<2x128xf32>
    tpu.vector_store %arg15[%c0_45, %c0_46], %92 {strides = array<i32>} : memref<2x128xf32, #tpu.memory_space<vmem>>, vector<2x128xf32>,
    return
  }
  func.func @transform_0(%arg0: i32) -> (i32, i32) {
    %c0_i32 = arith.constant 0 : i32
    %c0_i32_0 = arith.constant 0 : i32
    return %arg0, %c0_i32 : i32, i32
  }
  func.func @transform_1(%arg0: i32) -> (i32, i32) {
    %c0_i32 = arith.constant 0 : i32
    %c0_i32_0 = arith.constant 0 : i32
    %c0_i32_1 = arith.constant 0 : i32
    return %c0_i32, %c0_i32_0 : i32, i32
  }
  func.func @transform_2(%arg0: i32) -> (i32, i32) {
    %c0_i32 = arith.constant 0 : i32
    %c0_i32_0 = arith.constant 0 : i32
    return %arg0, %c0_i32 : i32, i32
  }
  func.func @transform_3(%arg0: i32) -> (i32, i32) {
    %c0_i32 = arith.constant 0 : i32
    %c0_i32_0 = arith.constant 0 : i32
    %c0_i32_1 = arith.constant 0 : i32
    return %c0_i32, %c0_i32_0 : i32, i32
  }
  func.func @transform_4(%arg0: i32) -> (i32, i32) {
    %c0_i32 = arith.constant 0 : i32
    %c0_i32_0 = arith.constant 0 : i32
    %c0_i32_1 = arith.constant 0 : i32
    return %c0_i32, %c0_i32_0 : i32, i32
  }
  func.func @transform_5(%arg0: i32) -> (i32, i32) {
    %c0_i32 = arith.constant 0 : i32
    %c0_i32_0 = arith.constant 0 : i32
    %c0_i32_1 = arith.constant 0 : i32
    return %c0_i32, %c0_i32_0 : i32, i32
  }
  func.func @transform_6(%arg0: i32) -> (i32, i32) {
    %c0_i32 = arith.constant 0 : i32
    %c0_i32_0 = arith.constant 0 : i32
    %c0_i32_1 = arith.constant 0 : i32
    return %c0_i32, %c0_i32_0 : i32, i32
  }
  func.func @transform_7(%arg0: i32) -> (i32, i32) {
    %c0_i32 = arith.constant 0 : i32
    %c0_i32_0 = arith.constant 0 : i32
    %c0_i32_1 = arith.constant 0 : i32
    return %c0_i32, %c0_i32_0 : i32, i32
  }
  func.func @transform_8(%arg0: i32) -> (i32, i32) {
    %c0_i32 = arith.constant 0 : i32
    %c0_i32_0 = arith.constant 0 : i32
    %c0_i32_1 = arith.constant 0 : i32
    return %c0_i32, %c0_i32_0 : i32, i32
  }
  func.func @transform_9(%arg0: i32) -> (i32, i32) {
    %c0_i32 = arith.constant 0 : i32
    %c0_i32_0 = arith.constant 0 : i32
    %c0_i32_1 = arith.constant 0 : i32
    return %c0_i32, %c0_i32_0 : i32, i32
  }
  func.func @transform_10(%arg0: i32) -> (i32, i32) {
    %c0_i32 = arith.constant 0 : i32
    %c0_i32_0 = arith.constant 0 : i32
    %c0_i32_1 = arith.constant 0 : i32
    return %c0_i32, %c0_i32_0 : i32, i32
  }
  func.func @transform_11(%arg0: i32) -> (i32, i32) {
    %c0_i32 = arith.constant 0 : i32
    %c0_i32_0 = arith.constant 0 : i32
    %c0_i32_1 = arith.constant 0 : i32
    return %c0_i32, %c0_i32_0 : i32, i32
  }
  func.func @transform_12(%arg0: i32) -> (i32, i32) {
    %c0_i32 = arith.constant 0 : i32
    %c0_i32_0 = arith.constant 0 : i32
    %c0_i32_1 = arith.constant 0 : i32
    return %c0_i32, %c0_i32_0 : i32, i32
  }
  func.func @transform_13(%arg0: i32) -> (i32, i32) {
    %c0_i32 = arith.constant 0 : i32
    %c0_i32_0 = arith.constant 0 : i32
    %c0_i32_1 = arith.constant 0 : i32
    return %c0_i32, %c0_i32_0 : i32, i32
  }
  func.func @transform_14(%arg0: i32) -> (i32, i32) {
    %c0_i32 = arith.constant 0 : i32
    %c0_i32_0 = arith.constant 0 : i32
    return %arg0, %c0_i32 : i32, i32
  }
}

</mosaic_0001>

<bundles_post_ra>
// kernel: multi_view_forward.1
= control target key start
LH: loop header
LB: loop body
LE: loop exit
PB: predicated region body
PF: predicated region fallthrough
CT: control target
= control target key end

     0   :  { %v1299_v2 = vmov 0.0|0.0   ;;  %vm1300_vm0 = vmmov 0   ;;  %v1301_v4 = vmov 0.0   ;;  %v1302_v7 = vmov 0   ;;  %s1725_s0 = inlined_call_operand.vmem [shape: s32[48,1], index: 0, kind: input, shape index: {}]   ;;  %s1726_s1 = inlined_call_operand.vmem [shape: f32[50,16], index: 1, kind: input, shape index: {}]   ;;  %s1727_s2 = inlined_call_operand.vmem [shape: f32[2,16], index: 2, kind: input, shape index: {}]   ;;  %s1728_s3 = inlined_call_operand.vmem [shape: f32[16,128], index: 3, kind: input, shape index: {}]   ;;  %s1729_s4 = inlined_call_operand.vmem [shape: f32[1,128], index: 4, kind: input, shape index: {}]   ;;  %s1730_s5 = inlined_call_operand.vmem [shape: f32[128,128], index: 5, kind: input, shape index: {}]   ;;  %s1731_s6 = inlined_call_operand.vmem [shape: f32[1,128], index: 6, kind: input, shape index: {}]   ;;  %s1732_s7 = inlined_call_operand.vmem [shape: f32[128,128], index: 7, kind: input, shape index: {}]   ;;  %s1733_s8 = inlined_call_operand.vmem [shape: f32[1,128], index: 8, kind: input, shape index: {}]   ;;  %s1734_s9 = inlined_call_operand.vmem [shape: f32[1,128], index: 9, kind: input, shape index: {}]   ;;  %s1735_s10 = inlined_call_operand.vmem [shape: f32[1,128], index: 10, kind: input, shape index: {}]   ;;  %s1736_s11 = inlined_call_operand.vmem [shape: f32[48,128], index: 11, kind: input, shape index: {}]   ;;  %s1737_s12 = inlined_call_operand.vmem [shape: f32[1,128], index: 12, kind: input, shape index: {}]   ;;  %s1738_s13 = inlined_call_operand.vmem [shape: f32[1,128], index: 13, kind: input, shape index: {}]   ;;  %s1739_s14 = inlined_call_operand.hbm [shape: f32[2,128], index: 14, kind: output, shape index: {}]  }
   0x1   :  { %v49_v0 = vld [vmem:[%s1728_s3] sm:$0xff]  ;;  %v50_v1 = vld [vmem:[%s1728_s3 + $0x8] sm:$0xff]  ;;  %1180 = vmatprep.subr.bf16.mxu0 %v1299_v2  ;;  %1063 = vmatprep.mubr.msk.f32.mxu0 %vm1300_vm0, %v1301_v4  ;;  %v354_v6 = vld [vmem:[%s1725_s0 + $0x10] sm:$0xff]  ;;  %vm58_vm1 = vcmask 130048  }
   0x2   :  { %v1181_v3 = vpack.c.bf16 %v50_v1, %v49_v0  ;;  %v352_v5 = vld [vmem:[%s1725_s0] sm:$0xff]  ;;  %1263 = vset.pattern.permute.xlu0 %v1302_v7  ;;  %1264 = vset.pattern.permute.xlu1 %v1302_v7  ;;  %v134_v10 = vld [vmem:[%s1730_s5 + $0x8] sm:$0xff]  ;;  %v135_v13 = vld [vmem:[%s1730_s5 + $0x10] sm:$0xff] }
   0x3   :  { %v48_v8 = vld [vmem:[%s1727_s2] sm:$0x3]  ;;  %361 = vperm.xlu0 %1263, %v352_v5   ;;  %367 = vperm.xlu1 %1264, %v354_v6   ;;  %v353_v11 = vld [vmem:[%s1725_s0 + $0x8] sm:$0xff]  ;;  %v136_v14 = vld [vmem:[%s1730_s5 + $0x18] sm:$0xff] }
   0x4   :  { %1182 = vmatpush3.bf16.msra.mxu0 %v1181_v3  ;;  %v133_v9 = vld [vmem:[%s1730_s5] sm:$0xff]  ;;  %1183 = vmatprep.subr.bf16.mxu1 %v1299_v2  ;;  %v355_v15 = vld [vmem:[%s1725_s0 + $0x18] sm:$0xff]  ;;  %v1187_v16 = vpack.c.bf16 %v136_v14, %v135_v13  ;;  %v138_v18 = vld [vmem:[%s1730_s5 + $0x28] sm:$0xff] }
   0x5   :  { %v1184_v12 = vpack.c.bf16 %v134_v10, %v133_v9  ;;  %1098 = vmatprep.mubr.msk.f32.mxu1 %vm1300_vm0, %v1301_v4  ;;  %1207 = vmatprep.subr.bf16.mxu0 %v1299_v2  ;;  %v137_v17 = vld [vmem:[%s1730_s5 + $0x20] sm:$0xff] }
   0x6   :  { %v356_v19 = vld [vmem:[%s1725_s0 + $0x20] sm:$0xff] }
   0x7   :  { %1064 = vmatmul.mubr.msk.f32.vlgmr.msra.gmra.mrb[0].mxu0 %vm58_vm1, %v48_v8  ;;  %1185 = vmatpush3.bf16.msra.mxu1 %v1184_v12 }
   0x8   :  { %364 = vperm.xlu0 %1263, %v353_v11   ;;  %1186 = vmatprep.subr.bf16.mxu1 %v1299_v2 }
   0x9   :  { %370 = vperm.xlu1 %1264, %v355_v15   ;;  %1133 = vmatprep.mubr.msk.f32.mxu0 %vm1300_vm0, %v1301_v4 }
   0xa   :  { %19 = vsyncpa [#allocation3], 0  ;;  %v357_v20 = vld [vmem:[%s1725_s0 + $0x28] sm:$0xff]  ;;  %v1190_v21 = vpack.c.bf16 %v138_v18, %v137_v17  ;;  %v139_v22 = vld [vmem:[%s1730_s5 + $0x30] sm:$0xff]  ;;  %v358_v61 = vlaneseq  ;;  %vm403_vm3 = vcmask 408576   ;;  %vm320_vm4 = vcmask 1041408  }
   0xb   :  { %1188 = vmatpush3.bf16.msra.mxu1 %v1187_v16  ;;  %v140_v23 = vld [vmem:[%s1730_s5 + $0x38] sm:$0xff]  ;;  %v141_v25 = vld [vmem:[%s1730_s5 + $0x40] sm:$0xff]  ;;  %v142_v26 = vld [vmem:[%s1730_s5 + $0x48] sm:$0xff]  ;;  %s1304_s23 = smov 32   ;;  %vm602_vm12 = vcmask 261120   ;;  %vm622_vm13 = vcmask 392192  }
   0xc   :  { %373 = vperm.xlu0 %1263, %v356_v19   ;;  %1189 = vmatprep.subr.bf16.mxu1 %v1299_v2  ;;  %v1193_v24 = vpack.c.bf16 %v140_v23, %v139_v22  ;;  %v1196_v27 = vpack.c.bf16 %v142_v26, %v141_v25  ;;  %v143_v28 = vld [vmem:[%s1730_s5 + $0x50] sm:$0xff]  ;;  %v144_v29 = vld [vmem:[%s1730_s5 + $0x58] sm:$0xff]  ;;  %v145_v31 = vld [vmem:[%s1730_s5 + $0x60] sm:$0xff]  ;;  %v359_v62 = vand.u32 127, %v358_v61  ;;  %vm840_vm14 = vcmask 1041409  }
   0xd   :  { %376 = vperm.xlu1 %1264, %v357_v20   ;;  %v1199_v30 = vpack.c.bf16 %v144_v29, %v143_v28  ;;  %v146_v32 = vld [vmem:[%s1730_s5 + $0x68] sm:$0xff]  ;;  %v147_v34 = vld [vmem:[%s1730_s5 + $0x70] sm:$0xff]  ;;  %v148_v35 = vld [vmem:[%s1730_s5 + $0x78] sm:$0xff]  ;;  %vm843_vm15 = vcmask 1042434   ;;  %vm851_vm0 = vcmask 1042432  }
   0xe   :  { %v1202_v33 = vpack.c.bf16 %v146_v32, %v145_v31  ;;  %v1205_v36 = vpack.c.bf16 %v148_v35, %v147_v34  ;;  %v396_v37 = vld [vmem:[%s1726_s1] sm:$0xff]  ;;  %v397_v38 = vld [vmem:[%s1726_s1 + $0x8] sm:$0xff]  ;;  %v229_v42 = vld [vmem:[%s1732_s7 + $0x10] sm:$0xff] }
   0xf   :  { %1191 = vmatpush3.bf16.msra.mxu1 %v1190_v21  ;;  %v1231_v39 = vpack.c.bf16 %v397_v38, %v396_v37  ;;  %v227_v40 = vld [vmem:[%s1732_s7] sm:$0xff]  ;;  %v228_v41 = vld [vmem:[%s1732_s7 + $0x8] sm:$0xff]  ;;  %v230_v44 = vld [vmem:[%s1732_s7 + $0x18] sm:$0xff] }
  0x10   :  { %1192 = vmatprep.subr.bf16.mxu1 %v1299_v2  ;;  %v1208_v43 = vpack.c.bf16 %v228_v41, %v227_v40  ;;  %v1211_v45 = vpack.c.bf16 %v230_v44, %v229_v42  ;;  %v231_v46 = vld [vmem:[%s1732_s7 + $0x20] sm:$0xff]  ;;  %v232_v47 = vld [vmem:[%s1732_s7 + $0x28] sm:$0xff]  ;;  %v233_v49 = vld [vmem:[%s1732_s7 + $0x30] sm:$0xff]  ;;  %v1590_v40 = vshrl.u32 %v358_v61, 7 }
  0x11   :  { %v1214_v48 = vpack.c.bf16 %v232_v47, %v231_v46  ;;  %v234_v50 = vld [vmem:[%s1732_s7 + $0x38] sm:$0xff]  ;;  %v235_v52 = vld [vmem:[%s1732_s7 + $0x40] sm:$0xff]  ;;  %v236_v53 = vld [vmem:[%s1732_s7 + $0x48] sm:$0xff] }
  0x12   :  { %1209 = vmatpush3.bf16.msra.mxu0 %v1208_v43  ;;  %v1217_v51 = vpack.c.bf16 %v234_v50, %v233_v49  ;;  %v1220_v54 = vpack.c.bf16 %v236_v53, %v235_v52  ;;  %v237_v55 = vld [vmem:[%s1732_s7 + $0x50] sm:$0xff]  ;;  %v238_v56 = vld [vmem:[%s1732_s7 + $0x58] sm:$0xff]  ;;  %v239_v58 = vld [vmem:[%s1732_s7 + $0x60] sm:$0xff]  ;;  %vm528_vm10 = vcmp.lt.s32.totalorder %v1590_v40, 7  ;;  %vm541_vm11 = vcmp.lt.s32.totalorder %v1590_v40, 6 }
  0x13   :  { %1194 = vmatpush3.bf16.msra.mxu1 %v1193_v24  ;;  %1210 = vmatprep.subr.bf16.mxu0 %v1299_v2  ;;  %v1223_v57 = vpack.c.bf16 %v238_v56, %v237_v55  ;;  %v240_v59 = vld [vmem:[%s1732_s7 + $0x68] sm:$0xff]  ;;  %v970_v63 = vld [vmem:[%s1729_s4] ss:$0 sm:$0xff]  ;;  %v398_v3 = vld [vmem:[%s1726_s1 + $0x10] sm:$0xff] }
  0x14   :  { %1195 = vmatprep.subr.bf16.mxu1 %v1299_v2  ;;  %v1226_v60 = vpack.c.bf16 %v240_v59, %v239_v58  ;;  %v399_v5 = vld [vmem:[%s1726_s1 + $0x18] sm:$0xff]  ;;  %v400_v10 = vld [vmem:[%s1726_s1 + $0x20] sm:$0xff]  ;;  %v401_v11 = vld [vmem:[%s1726_s1 + $0x28] sm:$0xff] }
  0x15   :  { %v1235_v8 = vpack.c.bf16 %v399_v5, %v398_v3  ;;  %v1239_v13 = vpack.c.bf16 %v401_v11, %v400_v10  ;;  %v402_v15 = vld [vmem:[%s1726_s1 + $0x30] sm:$0x3]  ;;  %v242_v25 = vld [vmem:[%s1732_s7 + $0x78] sm:$0xff]  ;;  %v972_v29 = vld [vmem:[%s1731_s6] ss:$0 sm:$0xff] }
  0x16   :  { %1212 = vmatpush3.bf16.msra.mxu0 %v1211_v45  ;;  %v241_v24 = vld [vmem:[%s1732_s7 + $0x70] sm:$0xff]  ;;  %v612_v35 = vld [vmem:[%s1736_s11 + $0x18] sm:$0xff]  ;;  %v613_v37 = vld [vmem:[%s1736_s11 + $0x20] sm:$0xff] }
  0x17   :  { %1197 = vmatpush3.bf16.msra.mxu1 %v1196_v27  ;;  %1213 = vmatprep.subr.bf16.mxu0 %v1299_v2  ;;  %v1229_v26 = vpack.c.bf16 %v242_v25, %v241_v24  ;;  %v609_v27 = vld [vmem:[%s1736_s11] sm:$0xff]  ;;  %v611_v34 = vld [vmem:[%s1736_s11 + $0x10] sm:$0xff]  ;;  %v614_v38 = vld [vmem:[%s1736_s11 + $0x28] sm:$0xff] }
  0x18   :  { %1198 = vmatprep.subr.bf16.mxu1 %v1299_v2 }
  0x1a   :  { %1215 = vmatpush3.bf16.msra.mxu0 %v1214_v48 }
  0x1b   :  { %1200 = vmatpush3.bf16.msra.mxu1 %v1199_v30  ;;  %1216 = vmatprep.subr.bf16.mxu0 %v1299_v2 }
  0x1c   :  { %1201 = vmatprep.subr.bf16.mxu1 %v1299_v2 }
  0x1e   :  { %1218 = vmatpush3.bf16.msra.mxu0 %v1217_v51 }
  0x1f   :  { %1203 = vmatpush3.bf16.msra.mxu1 %v1202_v33  ;;  %1219 = vmatprep.subr.bf16.mxu0 %v1299_v2 }
  0x20   :  { %1204 = vmatprep.subr.bf16.mxu1 %v1299_v2 }
  0x22   :  { %1221 = vmatpush3.bf16.msra.mxu0 %v1220_v54 }
  0x23   :  { %1206 = vmatpush3.bf16.msra.mxu1 %v1205_v36  ;;  %1222 = vmatprep.subr.bf16.mxu0 %v1299_v2  ;;  %v1247_v36 = vpack.c.bf16 %v612_v35, %v611_v34 }
  0x24   :  { %1232 = vmatprep.subr.bf16.mxu1 %v1231_v39 }
  0x26   :  { %1224 = vmatpush3.bf16.msra.mxu0 %v1223_v57 }
  0x27   :  { %1225 = vmatprep.subr.bf16.mxu0 %v1299_v2 }
  0x2a   :  { %1227 = vmatpush3.bf16.msra.mxu0 %v1226_v60 }
  0x2b   :  { %1228 = vmatprep.subr.bf16.mxu0 %v1299_v2 }
  0x2e   :  { %1230 = vmatpush3.bf16.msra.mxu0 %v1229_v26 }
  0x82   :  { %v362_v0 = vpop.permute.xlu0 %361  ;;  %v368_v12 = vpop.permute.xlu1 %367 }
  0x83   :  { %vm378_vm2 = vcmp.eq.s32.totalorder %v362_v0, %v359_v62  ;;  %vm380_vm6 = vcmp.eq.s32.totalorder %v368_v12, %v359_v62 }
  0x84   :  { %v976_v9 = vsel %vm378_vm2, 1.0, %v1301_v4  ;;  %v978_v19 = vsel %vm380_vm6, 1.0, %v1301_v4 }
  0x87   :  { %v365_v14 = vpop.permute.xlu0 %364 }
  0x88   :  { %v371_v16 = vpop.permute.xlu1 %370  ;;  %vm379_vm5 = vcmp.eq.s32.totalorder %v365_v14, %v359_v62 }
  0x89   :  { %v977_v18 = vsel %vm379_vm5, 1.0, %v1301_v4  ;;  %vm381_vm7 = vcmp.eq.s32.totalorder %v371_v16, %v359_v62 }
  0x8a   :  { %v979_v21 = vsel %vm381_vm7, 1.0, %v1301_v4 }
  0x8b   :  { %v374_v17 = vpop.permute.xlu0 %373 }
  0x8c   :  { %vm382_vm8 = vcmp.eq.s32.totalorder %v374_v17, %v359_v62  ;;  %v377_v20 = vpop.permute.xlu1 %376 }
  0x8d   :  { %v980_v22 = vsel %vm382_vm8, 1.0, %v1301_v4  ;;  %vm383_vm9 = vcmp.eq.s32.totalorder %v377_v20, %v359_v62 }
  0x8e   :  { %v981_v23 = vsel %vm383_vm9, 1.0, %v1301_v4  ;;  %v610_v4 = vld [vmem:[%s1736_s11 + $0x8] sm:$0xff]  ;;  %s1303_s11 = smov 16  }
  0x8f   :  { %v1243_v28 = vpack.c.bf16 %v610_v4, %v609_v27 }
  0x91   :  { %1244 = vmatprep.subr.bf16.mxu0 %v1243_v28 }
  0xda   :  { %v128_v1 = vpop.f32.mrb[0].mxu0 }
  0xdb   :  { %v129_v6 = vadd.f32 %v970_v63, %v128_v1  ;;  %v1065_v2 = vpop.f32.mrb[1].mxu0 }
  0xdd   :  { %v132_v7 = vmax.f32 %v129_v6, 0.0 }
  0xdf   :  { %1099 = vmatmul.mubr.f32.vlgmr.msra.gmra.mrb[0].mxu1 %v132_v7 }
  0xe0   :  { %1234 = vmatpush3.bf16.msra.mxu1 %v1231_v39  ;;  %1150 = vmatprep.mubr.msk.f32.mxu1 %vm403_vm3, %v976_v9  ;;  %v1251_v39 = vpack.c.bf16 %v614_v38, %v613_v37 }
  0xe1   :  { %1236 = vmatprep.subr.bf16.mxu1 %v1235_v8 }
  0xe4   :  { %1238 = vmatpush3.bf16.msra.mxu1 %v1235_v8 }
  0xe5   :  { %1240 = vmatprep.subr.bf16.mxu1 %v1239_v13 }
  0xe8   :  { %1242 = vmatpush3.bf16.msra.mxu1 %v1239_v13 }
  0xe9   :  { %1148 = vmatprep.subr.msk.mxu1 %vm320_vm4, %v402_v15 }
  0xec   :  { %1149 = vmatpush3.msk.msra.mxu1 %vm320_vm4, %v402_v15 }
  0xed   :  { %1151 = vmatmul.mubr.msk.f32.vlgmr.msra.gmra.mrb[2].mxu1 %vm403_vm3, %v977_v18 }
  0xee   :  { %1153 = vmatprep.mubr.msk.f32.mxu1 %vm403_vm3, %v978_v19 }
  0xf1   :  { %1154 = vmatmul.mubr.msk.f32.gmra.mrb[4].mxu1 %vm403_vm3, %v979_v21 }
  0xf2   :  { %1156 = vmatprep.mubr.msk.f32.mxu1 %vm403_vm3, %v980_v22 }
  0xf5   :  { %1157 = vmatmul.mubr.msk.f32.gmra.mrb[6].mxu1 %vm403_vm3, %v981_v23 }
 0x1b2   :  { %v222_v30 = vpop.f32.mrb[0].mxu1 }
 0x1b3   :  { %v223_v31 = vadd.f32 %v972_v29, %v222_v30  ;;  %v1100_v32 = vpop.f32.mrb[1].mxu1 }
 0x1b5   :  { %v226_v33 = vmax.f32 %v223_v31, 0.0  ;;  %v973_v31 = vld [vmem:[%s1733_s8] ss:$0 sm:$0xff] }
 0x1b7   :  { %1134 = vmatmul.mubr.f32.vlgmr.msra.gmra.mrb[2].mxu0 %v226_v33 }
 0x1b8   :  { %1246 = vmatpush3.bf16.msra.mxu0 %v1243_v28 }
 0x1b9   :  { %1248 = vmatprep.subr.bf16.mxu0 %v1247_v36 }
 0x1bc   :  { %1250 = vmatpush3.bf16.msra.mxu0 %v1247_v36 }
 0x1bd   :  { %1252 = vmatprep.subr.bf16.mxu0 %v1251_v39 }
 0x1c0   :  { %v1152_v41 = vpop.f32.mrb[2].mxu1  ;;  %1254 = vmatpush3.bf16.msra.mxu0 %v1251_v39 }
 0x1c1   :  { %v521_v42 = vrot.slane %v1152_v41, 1  ;;  %v536_v43 = vrot.slane %v1152_v41, 2  ;;  %v491_v44 = vpop.f32.mrb[3].mxu1 }
 0x1c2   :  { %v520_v45 = vrot.slane %v491_v44, 1  ;;  %v535_v46 = vrot.slane %v491_v44, 2 }
 0x1c4   :  { %v1155_v47 = vpop.f32.mrb[4].mxu1  ;;  %v533_v48 = vsel %vm528_vm10, %v520_v45, %v521_v42  ;;  %v546_v49 = vsel %vm541_vm11, %v535_v46, %v536_v43 }
 0x1c5   :  { %v523_v50 = vrot.slane %v1155_v47, 1  ;;  %v538_v51 = vrot.slane %v1155_v47, 2  ;;  %554 = vrot.lane.b32.xlu0 %v533_v48, %s1303_s11  ;;  %v501_v52 = vpop.f32.mrb[5].mxu1 }
 0x1c6   :  { %v522_v53 = vrot.slane %v501_v52, 1  ;;  %v537_v54 = vrot.slane %v501_v52, 2 }
 0x1c8   :  { %v1158_v55 = vpop.f32.mrb[6].mxu1  ;;  %v532_v56 = vsel %vm528_vm10, %v521_v42, %v522_v53  ;;  %v545_v57 = vsel %vm541_vm11, %v536_v43, %v537_v54  ;;  %v531_v58 = vsel %vm528_vm10, %v522_v53, %v523_v50  ;;  %v544_v59 = vsel %vm541_vm11, %v537_v54, %v538_v51 }
 0x1c9   :  { %v525_v60 = vrot.slane %v1158_v55, 1  ;;  %v540_v61 = vrot.slane %v1158_v55, 2  ;;  %578 = vrot.lane.b32.xlu0 %v546_v49, %s1304_s23  ;;  %556 = vrot.lane.b32.xlu1 %v532_v56, %s1303_s11  ;;  %v511_v62 = vpop.f32.mrb[7].mxu1 }
 0x1ca   :  { %v524_v63 = vrot.slane %v511_v62, 1  ;;  %v539_v0 = vrot.slane %v511_v62, 2 }
 0x1cb   :  { %v534_v1 = vsel %vm528_vm10, %v525_v60, %v520_v45  ;;  %v547_v3 = vsel %vm541_vm11, %v540_v61, %v535_v46 }
 0x1cc   :  { %v530_v5 = vsel %vm528_vm10, %v523_v50, %v524_v63  ;;  %v529_v6 = vsel %vm528_vm10, %v524_v63, %v525_v60  ;;  %v543_v2 = vsel %vm541_vm11, %v538_v51, %v539_v0  ;;  %v542_v7 = vsel %vm541_vm11, %v539_v0, %v540_v61 }
 0x1cd   :  { %580 = vrot.lane.b32.xlu1 %v545_v57, %s1304_s23  ;;  %558 = vrot.lane.b32.xlu0 %v531_v58, %s1303_s11 }
 0x1d1   :  { %582 = vrot.lane.b32.xlu0 %v544_v59, %s1304_s23  ;;  %564 = vrot.lane.b32.xlu1 %v534_v1, %s1303_s11 }
 0x1d5   :  { %560 = vrot.lane.b32.xlu1 %v530_v5, %s1303_s11  ;;  %562 = vrot.lane.b32.xlu0 %v529_v6, %s1303_s11 }
 0x1d9   :  { %584 = vrot.lane.b32.xlu1 %v543_v2, %s1304_s23  ;;  %586 = vrot.lane.b32.xlu0 %v542_v7, %s1304_s23 }
 0x1dd   :  { %588 = vrot.lane.b32.xlu1 %v547_v3, %s1304_s23 }
 0x237   :  { %v555_v8 = vpop.permute.xlu0 %554 }
 0x238   :  { %v596_v9 = vsel %vm58_vm1, %v491_v44, %v555_v8 }
 0x23b   :  { %v579_v10 = vpop.permute.xlu0 %578  ;;  %v557_v11 = vpop.permute.xlu1 %556 }
 0x23c   :  { %v603_v12 = vsel %vm602_vm12, %v596_v9, %v579_v10  ;;  %v597_v13 = vsel %vm58_vm1, %v1152_v41, %v557_v11  ;;  %v989_v41 = vld [vmem:[%s1737_s12] ss:$0 sm:$0xff] }
 0x23d   :  { %1171 = vmatprep.mubr.msk.f32.mxu0 %vm622_vm13, %v603_v12 }
 0x23f   :  { %v581_v14 = vpop.permute.xlu1 %580  ;;  %v559_v15 = vpop.permute.xlu0 %558 }
 0x240   :  { %v604_v16 = vsel %vm602_vm12, %v597_v13, %v581_v14  ;;  %v598_v17 = vsel %vm58_vm1, %v501_v52, %v559_v15  ;;  %v1305_v15 = vmov 1966171168  }
 0x241   :  { %1172 = vmatmul.mubr.msk.f32.vlgmr.msra.gmra.mrb[4].mxu0 %vm622_vm13, %v604_v16  ;;  %v796_v16 = vunpack.c.l.s4 %v1305_v15 }
 0x243   :  { %v583_v18 = vpop.permute.xlu0 %582  ;;  %v565_v19 = vpop.permute.xlu1 %564 }
 0x244   :  { %v605_v20 = vsel %vm602_vm12, %v598_v17, %v583_v18  ;;  %v601_v28 = vsel %vm58_vm1, %v1158_v55, %v565_v19 }
 0x245   :  { %1174 = vmatprep.mubr.msk.f32.mxu0 %vm622_vm13, %v605_v20 }
 0x247   :  { %v561_v21 = vpop.permute.xlu1 %560  ;;  %v563_v22 = vpop.permute.xlu0 %562 }
 0x248   :  { %v599_v23 = vsel %vm58_vm1, %v1155_v47, %v561_v21  ;;  %v600_v24 = vsel %vm58_vm1, %v511_v62, %v563_v22 }
 0x24b   :  { %v585_v25 = vpop.permute.xlu1 %584  ;;  %v587_v26 = vpop.permute.xlu0 %586 }
 0x24c   :  { %v606_v27 = vsel %vm602_vm12, %v599_v23, %v585_v25  ;;  %v607_v4 = vsel %vm602_vm12, %v600_v24, %v587_v26  ;;  %v974_v23 = vld [vmem:[%s1734_s9] ss:$0 sm:$0xff]  ;;  %s1306_s9 = smov [#allocation2]  }
 0x24d   :  { %1175 = vmatmul.mubr.msk.f32.gmra.mrb[6].mxu0 %vm622_vm13, %v606_v27  ;;  %v797_v27 = vunpack.c.0.s8 %v796_v16 }
 0x24e   :  { %1177 = vmatprep.mubr.msk.f32.mxu0 %vm622_vm13, %v607_v4  ;;  %v975_v4 = vld [vmem:[%s1735_s10] ss:$0 sm:$0xff]  ;;  %s962_s10 = sshll.u32 %s1306_s9, 4  ;;  %s963_s10 = int_to_ptr.vmem [resolvable:$true] %s962_s10 }
 0x24f   :  { %v589_v29 = vpop.permute.xlu1 %588  ;;  %p1280_p1 = scmp.lt.s32.totalorder %s963_s10, %s963_s10 }
 0x250   :  { %v608_v30 = vsel %vm602_vm12, %v601_v28, %v589_v29 }
 0x251   :  { %1178 = vmatmul.mubr.msk.f32.gmra.mrb[8].mxu0 %vm622_vm13, %v608_v30 }
 0x28a   :  { %v316_v32 = vpop.f32.mrb[2].mxu0 }
 0x28b   :  { %v317_v33 = vadd.f32 %v973_v31, %v316_v32  ;;  %v1135_v34 = vpop.f32.mrb[3].mxu0 }
 0x28d   :  { %v321_v35 = vsel %vm320_vm4, %v317_v33, 0.0  ;;  %v325_v36 = vmul.f32 %v317_v33, %v317_v33 }
 0x28e   :  { %322 = vadd.xlane.f32.xlu0 %v321_v35 }
 0x28f   :  { %v326_v37 = vsel %vm320_vm4, %v325_v36, 0.0 }
 0x290   :  { %327 = vadd.xlane.f32.xlu1 %v326_v37  ;;  %v800_v37 = vsub.s32 %v797_v27, %v1590_v40 }
 0x314   :  { %v1173_v38 = vpop.f32.mrb[4].mxu0 }
 0x315   :  { %v707_v39 = vpop.f32.mrb[5].mxu0  ;;  %v713_v43 = vadd.f32 %v1173_v38, %v989_v41 }
 0x316   :  { %v708_v48 = vadd.f32 %v989_v41, %v707_v39 }
 0x317   :  { %v737_v49 = vmax.f32 %v713_v43, 0.0 }
 0x318   :  { %v736_v56 = vmax.f32 %v708_v48, 0.0 }
 0x319   :  { %v745_v57 = vsel %vm541_vm11, %v737_v49, 0.0 }
 0x31a   :  { %v756_v1 = vrot.slane %v745_v57, 4  ;;  %v744_v3 = vsel %vm541_vm11, %v736_v56, 0.0 }
 0x31b   :  { %v323_v42 = vpop.xlane.xlu0 %322  ;;  %v750_v9 = vrot.slane %v744_v3, 4 }
 0x31c   :  { %v324_v44 = vmul.f32 0.03125, %v323_v42  ;;  %v757_v12 = vmax.f32 %v745_v57, %v756_v1 }
 0x31d   :  { %v328_v45 = vpop.xlane.xlu1 %327  ;;  %v751_v22 = vmax.f32 %v744_v3, %v750_v9 }
 0x31e   :  { %v330_v46 = vmul.f32 %v324_v44, %v324_v44  ;;  %v329_v47 = vmul.f32 0.03125, %v328_v45  ;;  %v332_v18 = vsub.f32 %v317_v33, %v324_v44  ;;  %v758_v24 = vrot.slane %v757_v12, 2  ;;  %v996_v33 = vld [vmem:[%s1738_s13] ss:$0 sm:$0xff]  ;;  %s1275_s13 = scalar_lea.vmem %s963_s10, 32 }
 0x31f   :  { %v752_v32 = vrot.slane %v751_v22, 2  ;;  %p1276_p0 = scmp.ne.s32.totalorder %s963_s10, %s1275_s13  ;;  %p1281_p2 = scmp.lt.s32.totalorder %s1275_s13, %s1275_s13 }
 0x320   :  { %v331_v50 = vsub.f32 %v329_v47, %v330_v46  ;;  %v1176_v51 = vpop.f32.mrb[6].mxu0  ;;  %v759_v34 = vmax.f32 %v757_v12, %v758_v24  ;;  %v819_v47 = vsub.s32 0, %v1590_v40 }
 0x321   :  { %v723_v52 = vadd.f32 %v1176_v51, %v989_v41  ;;  %v717_v53 = vpop.f32.mrb[7].mxu0  ;;  %v753_v43 = vmax.f32 %v751_v22, %v752_v32  ;;  %p1282_p3 = por %p1281_p2, %p1280_p1 }
 0x322   :  { %v333_v54 = vadd.f32 1e-05, %v331_v50  ;;  %v718_v55 = vadd.f32 %v989_v41, %v717_v53  ;;  %v760_v44 = vrot.slane %v759_v34, 1 }
 0x323   :  { %v739_v58 = vmax.f32 %v723_v52, 0.0  ;;  %v754_v53 = vrot.slane %v753_v43, 1  ;;  %p1283_p4 = pnand %p1282_p3, %p1276_p0 }
 0x324   :  { %1265 = vrsqrt.f32 %v333_v54  ;;  %v738_v59 = vmax.f32 %v718_v55, 0.0  ;;  %v1179_v60 = vpop.f32.mrb[8].mxu0  ;;  %v1670_v54 = vmax.f32 %v759_v34, %v760_v44 }
 0x325   :  { %v733_v61 = vadd.f32 %v1179_v60, %v989_v41  ;;  %v727_v62 = vpop.f32.mrb[9].mxu0  ;;  %v747_v6 = vsel %vm541_vm11, %v739_v58, 0.0 }
 0x326   :  { %v746_v63 = vsel %vm541_vm11, %v738_v59, 0.0  ;;  %v728_v0 = vadd.f32 %v989_v41, %v727_v62  ;;  %v768_v13 = vrot.slane %v747_v6, 4  ;;  %v1679_v62 = vmax.f32 %v753_v43, %v754_v53 }
 0x327   :  { %v741_v5 = vmax.f32 %v733_v61, 0.0  ;;  %v762_v2 = vrot.slane %v746_v63, 4 }
 0x328   :  { %v740_v7 = vmax.f32 %v728_v0, 0.0  ;;  %v769_v26 = vmax.f32 %v747_v6, %v768_v13 }
 0x329   :  { %v749_v8 = vsel %vm541_vm11, %v741_v5, 0.0  ;;  %v763_v17 = vmax.f32 %v746_v63, %v762_v2 }
 0x32a   :  { %v780_v10 = vrot.slane %v749_v8, 4  ;;  %v748_v11 = vsel %vm541_vm11, %v740_v7, 0.0  ;;  %v770_v36 = vrot.slane %v769_v26, 2 }
 0x32b   :  { %v774_v14 = vrot.slane %v748_v11, 4  ;;  %v764_v28 = vrot.slane %v763_v17, 2 }
 0x32c   :  { %v781_v19 = vmax.f32 %v749_v8, %v780_v10  ;;  %v771_v45 = vmax.f32 %v769_v26, %v770_v36 }
 0x32d   :  { %v775_v20 = vmax.f32 %v748_v11, %v774_v14  ;;  %v765_v38 = vmax.f32 %v763_v17, %v764_v28 }
 0x32e   :  { %v1266_v21 = vpop.eup %1265  ;;  %v782_v30 = vrot.slane %v781_v19, 2  ;;  %v772_v55 = vrot.slane %v771_v45, 1 }
 0x32f   :  { %v335_v25 = vmul.f32 %v1266_v21, %v332_v18  ;;  %v776_v31 = vrot.slane %v775_v20, 2  ;;  %v766_v48 = vrot.slane %v765_v38, 1 }
 0x330   :  { %v783_v39 = vmax.f32 %v781_v19, %v782_v30  ;;  %v1682_v0 = vmax.f32 %v771_v45, %v772_v55 }
 0x331   :  { %v343_v29 = vmul.f32 %v974_v23, %v335_v25  ;;  %v777_v41 = vmax.f32 %v775_v20, %v776_v31  ;;  %v1672_v58 = vmax.f32 %v765_v38, %v766_v48 }
 0x332   :  { %v784_v49 = vrot.slane %v783_v39, 1 }
 0x333   :  { %v1665_v35 = vadd.f32 %v975_v4, %v343_v29  ;;  %v778_v50 = vrot.slane %v777_v41, 1 }
 0x334   :  { %v1674_v59 = vmax.f32 %v783_v39, %v784_v49 }
 0x335   :  { %v793_v42 = vadd.f32 %v996_v33, %v1665_v35  ;;  %v1676_v60 = vmax.f32 %v777_v41, %v778_v50 }
 0x337   :  { %v801_v46 = vrot.slane %v793_v42, %v800_v37 }
 0x339   :  { %v802_v51 = vcombine.high %v801_v46, %v801_v46  ;;  %v809_v52 = vrot.slane %v801_v46, %v800_v37 }
 0x33b   :  { %v816_v56 = vrot.slane %v802_v51, %v800_v37  ;;  %v820_v57 = vrot.slane %v809_v52, %v819_v47 }
 0x33d   :  { %v824_v61 = vrot.slane %v816_v56, %v819_v47  ;;  %v828_v40 = vmul.f32 %v820_v57, %v1670_v54  ;;  %v829_v63 = vmul.f32 %v820_v57, %v1672_v58  ;;  %v827_v8 = vmul.f32 %v820_v57, %v1679_v62 }
 0x33f   :  { %v831_v1 = vmul.f32 %v824_v61, %v1676_v60  ;;  %v832_v3 = vmul.f32 %v824_v61, %v1674_v59  ;;  %v839_v5 = vrot.slane %v828_v40, 7  ;;  %v830_v6 = vmul.f32 %v824_v61, %v1682_v0 }
 0x340   :  { %v842_v9 = vrot.slane %v829_v63, 6 }
 0x341   :  { %v845_v2 = vrot.slane %v831_v1, 7  ;;  %v847_v7 = vrot.slane %v832_v3, 6  ;;  %v841_v11 = vsel %vm840_vm14, %v839_v5, %v827_v8 }
 0x342   :  { %v844_v14 = vsel %vm843_vm15, %v842_v9, %v841_v11 }
 0x343   :  { %v846_v10 = vsel %vm840_vm14, %v845_v2, %v830_v6  ;;  %v852_v15 = vsel %vm851_vm0, %v844_v14, 0.0 }
 0x344   :  { %v848_v12 = vsel %vm843_vm15, %v847_v7, %v846_v10 }
 0x345   :  { %v855_v13 = vsel %vm851_vm0, %v848_v12, 0.0 }
 0x346   :  { %856 = vadd.xlane.f32.xlu0 %v855_v13 }
 0x34a   :  { %853 = vadd.xlane.f32.xlu0 %v852_v15 }
 0x3d3   :  { %v857_v16 = vpop.xlane.xlu0 %856 }
 0x3d4   :  { %v865_v17 = vsel %vm851_vm0, %v857_v16, -inf }
 0x3d5   :  { %v866_v18 = vrot.slane %v865_v17, 4 }
 0x3d7   :  { %v867_v19 = vmax.f32 %v865_v17, %v866_v18  ;;  %v854_v20 = vpop.xlane.xlu0 %853 }
 0x3d8   :  { %v858_v21 = vsel %vm851_vm0, %v854_v20, -inf }
 0x3d9   :  { %v868_v22 = vrot.slane %v867_v19, 2  ;;  %v859_v23 = vrot.slane %v858_v21, 4 }
 0x3db   :  { %v869_v24 = vmax.f32 %v867_v19, %v868_v22  ;;  %v860_v25 = vmax.f32 %v858_v21, %v859_v23  ;;  %v945_v23 = vrot.slane %v1665_v35, 1 }
 0x3dd   :  { %v870_v26 = vrot.slane %v869_v24, 1  ;;  %v861_v27 = vrot.slane %v860_v25, 2 }
 0x3df   :  { %v871_v4 = vmax.f32 %v869_v24, %v870_v26  ;;  %v862_v28 = vmax.f32 %v860_v25, %v861_v27 }
 0x3e1   :  { %v873_v29 = vsub.f32 %v857_v16, %v871_v4  ;;  %v863_v30 = vrot.slane %v862_v28, 1 }
 0x3e3   :  { %v876_v31 = vmul.f32 1.442695, %v873_v29  ;;  %v864_v32 = vmax.f32 %v862_v28, %v863_v30 }
 0x3e5   :  { %1267 = vpow2.f32 %v876_v31  ;;  %v872_v33 = vsub.f32 %v854_v20, %v864_v32 }
 0x3e7   :  { %v874_v34 = vmul.f32 1.442695, %v872_v33 }
 0x3e9   :  { %1269 = vpow2.f32 %v874_v34 }
 0x3ef   :  { %v1268_v36 = vpop.eup %1267 }
 0x3f0   :  { %v885_v37 = vsel %vm851_vm0, %v1268_v36, 0.0 }
 0x3f1   :  { %v886_v38 = vrot.slane %v885_v37, 4 }
 0x3f3   :  { %v1270_v39 = vpop.eup %1269  ;;  %v887_v41 = vadd.f32 %v886_v38, %v885_v37 }
 0x3f4   :  { %v878_v42 = vsel %vm851_vm0, %v1270_v39, 0.0 }
 0x3f5   :  { %v888_v43 = vrot.slane %v887_v41, 2  ;;  %v879_v44 = vrot.slane %v878_v42, 4 }
 0x3f7   :  { %v889_v45 = vadd.f32 %v888_v43, %v887_v41  ;;  %v880_v46 = vadd.f32 %v879_v44, %v878_v42 }
 0x3f9   :  { %v890_v47 = vrot.slane %v889_v45, 1  ;;  %v881_v48 = vrot.slane %v880_v46, 2 }
 0x3fb   :  { %v891_v49 = vadd.f32 %v890_v47, %v889_v45  ;;  %v882_v50 = vadd.f32 %v881_v48, %v880_v46 }
 0x3fd   :  { %1271 = vrcp.f32 %v891_v49  ;;  %v883_v51 = vrot.slane %v882_v50, 1 }
 0x3ff   :  { %v884_v52 = vadd.f32 %v883_v51, %v882_v50 }
 0x401   :  { %1273 = vrcp.f32 %v884_v52 }
 0x407   :  { %v1272_v53 = vpop.eup %1271 }
 0x408   :  { %v895_v55 = vmul.f32 %v1272_v53, %v1268_v36 }
 0x40a   :  { %v900_v56 = vrot.slane %v895_v55, 1  ;;  %v901_v57 = vrot.slane %v895_v55, 2  ;;  %v911_v3 = vmul.f32 %v895_v55, %v1682_v0 }
 0x40b   :  { %v1274_v61 = vpop.eup %1273 }
 0x40c   :  { %v912_v40 = vmul.f32 %v900_v56, %v1676_v60  ;;  %v893_v63 = vmul.f32 %v1274_v61, %v1270_v39  ;;  %v913_v1 = vmul.f32 %v901_v57, %v1674_v59 }
 0x40e   :  { %v924_v5 = vrot.slane %v912_v40, 7  ;;  %v898_v6 = vrot.slane %v893_v63, 1  ;;  %v899_v2 = vrot.slane %v893_v63, 2  ;;  %v926_v7 = vrot.slane %v913_v1, 6 }
 0x40f   :  { %v908_v12 = vmul.f32 %v893_v63, %v1679_v62 }
 0x410   :  { %v909_v8 = vmul.f32 %v898_v6, %v1670_v54  ;;  %v910_v9 = vmul.f32 %v899_v2, %v1672_v58  ;;  %v925_v10 = vsel %vm840_vm14, %v924_v5, %v911_v3 }
 0x411   :  { %v927_v11 = vsel %vm843_vm15, %v926_v7, %v925_v10 }
 0x412   :  { %v920_v60 = vrot.slane %v909_v8, 7  ;;  %v922_v13 = vrot.slane %v910_v9, 6  ;;  %v937_v59 = vsel %vm851_vm0, %v927_v11, 0.0 }
 0x413   :  { %v938_v14 = vrot.slane %v937_v59, 4 }
 0x414   :  { %v921_v0 = vsel %vm840_vm14, %v920_v60, %v908_v12 }
 0x415   :  { %v923_v15 = vsel %vm843_vm15, %v922_v13, %v921_v0  ;;  %v939_v16 = vadd.f32 %v938_v14, %v937_v59 }
 0x416   :  { %v930_v54 = vsel %vm851_vm0, %v923_v15, 0.0 }
 0x417   :  { %v931_v17 = vrot.slane %v930_v54, 4  ;;  %v940_v58 = vrot.slane %v939_v16, 2 }
 0x419   :  { %v932_v18 = vadd.f32 %v931_v17, %v930_v54  ;;  %v941_v19 = vadd.f32 %v940_v58, %v939_v16 }
 0x41b   :  { %v933_v20 = vrot.slane %v932_v18, 2  ;;  %v942_v21 = vrot.slane %v941_v19, 1 }
 0x41d   :  { %v934_v22 = vadd.f32 %v933_v20, %v932_v18  ;;  %v943_v62 = vadd.f32 %v942_v21, %v941_v19 }
 0x41f   :  { %v935_v24 = vrot.slane %v934_v22, 1  ;;  %v949_v25 = vadd.f32 %v945_v23, %v943_v62 }
 0x421   :  { %v936_v26 = vadd.f32 %v935_v24, %v934_v22  ;;  %v952_v4 = vrot.slane %v949_v25, 7 }
 0x423   :  { %v948_v27 = vadd.f32 %v936_v26, %v1665_v35 }
 0x425   :  { %v953_v28 = vsel %vm840_vm14, %v952_v4, %v948_v27 }
 0x426   :  { %955 = vst [vmem:[#allocation2] sm:$0x3] %v953_v28 }
 0x427   :  { %1286 = shalt.err (!%p1283_p4)
}
 0x428   :  { %s1287_s30 = scalar_lea.hbm %s1739_s14, 32 }
 0x429   :  { %p1288_p5 = scmp.ne.s32.totalorder %s1739_s14, %s1287_s30  ;;  %p1291_p6 = scmp.lt.u32.totalorder %s1287_s30, %s1739_s14 }
 0x42b   :  { %p1293_p7 = pnand %p1291_p6, %p1288_p5 }
 0x42d   :  { %1296 = shalt.err (!%p1293_p7)
}
 0x42e   :  { %965 = dma.vmem_to_hbm [thread:$0]  %s963_s10, 32, %s1739_s14, [#allocation3]  }
 0x42f   :  { %1297 = dma.done.wait [#allocation3], 32  }
 0x430   :  { %1298 = vsyncadd [#allocation3], 4294967264 }
 0x431   :  { %969 = vsyncpa [#allocation3], 1 }

</bundles_post_ra>
